<compile_context>
chip_gen: v7x
topology: tpu7x:2x2x1
jax: 0.10.0
libtpu: 0.0.40
codegen_flags: <defaults>
</compile_context>

<pallas_src>
import functools
import math

import jax
import jax.numpy as jnp
from jax.experimental import pallas as pl
from jax.experimental.pallas import tpu as pltpu

LANE = 128  # TPU lane width; all padded feature dims are multiples of this.


def _round_up(n, m):
    return ((n + m - 1) // m) * m


# ----------------------------------------------------------------------------
# Kernel
# ----------------------------------------------------------------------------
def _alpha_mlp_kernel(x_ref, w1_ref, b1_ref, w2_ref, b2_ref, w3_ref, b3_ref,
                      o_ref, *, num_tasks):
    # ---- Layer 1: Linear (bf16 MXU, f32 acc) + bias + ReLU ------------------
    h1 = jnp.dot(x_ref[...], w1_ref[...], preferred_element_type=jnp.float32)
    h1 = jnp.maximum(h1 + b1_ref[...], 0.0)

    # ---- Layer 2: Linear + bias + ReLU --------------------------------------
    h2 = jnp.dot(h1.astype(w2_ref.dtype), w2_ref[...],
                 preferred_element_type=jnp.float32)
    h2 = jnp.maximum(h2 + b2_ref[...], 0.0)

    # ---- Layer 3: Linear + bias ---------------------------------------------
    logits = jnp.dot(h2.astype(w3_ref.dtype), w3_ref[...],
                     preferred_element_type=jnp.float32)
    logits = logits + b3_ref[...]

    # Mask padded task lanes so they do not pollute the softmax.
    lane = jax.lax.broadcasted_iota(jnp.int32, logits.shape, dimension=1)
    logits = jnp.where(lane < num_tasks, logits, -1e30)

    # ---- Numerically stable softmax over the (lane-dense) last dim ----------
    m = jnp.max(logits, axis=-1, keepdims=True)
    e = jnp.exp(logits - m)
    denom = jnp.sum(e, axis=-1, keepdims=True)          # >= 1, safe for approx
    o_ref[...] = (e * pl.reciprocal(denom, approx=True)).astype(o_ref.dtype)


# ----------------------------------------------------------------------------
# Wrapper
# ----------------------------------------------------------------------------
def modelwise_alpha_predictor(x, params, *, num_tasks, block_batch=1024):
    """Full MLP + softmax in one pallas_call, tiled along the batch axis.

    x:      [batch, input_dim] float32 (unpadded, logical shape)
    params: padded kernel params from `pad_params_for_kernel` — weights are
            bf16 [in_p, out_p] (pre-transposed vs torch Linear), biases are
            f32 [1, out_p], all feature dims multiples of 128.
    """
    batch, in_dim = x.shape
    in_p = params["w1"].shape[0]
    tasks_p = params["w3"].shape[1]

    # Batch tile: multiple of 8 (sublane), capped so double-buffered tiles fit
    # comfortably in scoped VMEM on v5e/v6e/v7x (~1.5 KiB per padded row).
    tb = min(block_batch, _round_up(batch, 8))
    batch_p = _round_up(batch, tb)
    nb = batch_p // tb

    # Zero-pad x (batch -> multiple of tb, features -> 128) and cast to bf16.
    x_p = jnp.zeros((batch_p, in_p), jnp.bfloat16)
    x_p = x_p.at[:batch, :in_dim].set(x.astype(jnp.bfloat16))

    kernel = functools.partial(_alpha_mlp_kernel, num_tasks=num_tasks)

    # Weights/biases: constant index_map -> VMEM-resident, DMA'd once.
    def resident(shape):
        return pl.BlockSpec(shape, lambda i: (0, 0))

    out = pl.pallas_call(
        kernel,
        out_shape=jax.ShapeDtypeStruct((batch_p, tasks_p), jnp.float32),
        grid_spec=pltpu.PrefetchScalarGridSpec(
            num_scalar_prefetch=0,
            grid=(nb,),
            in_specs=[
                pl.BlockSpec((tb, in_p), lambda i: (i, 0)),   # x: batch-tiled
                resident(params["w1"].shape),
                resident(params["b1"].shape),
                resident(params["w2"].shape),
                resident(params["b2"].shape),
                resident(params["w3"].shape),
                resident(params["b3"].shape),
            ],
            out_specs=pl.BlockSpec((tb, tasks_p), lambda i: (i, 0)),
        ),
        compiler_params=pltpu.CompilerParams(
            dimension_semantics=("parallel",),        # megacore shard on v7x
            vmem_limit_bytes=64 * 1024 * 1024,
        ),
    )(x_p, params["w1"], params["b1"], params["w2"], params["b2"],
      params["w3"], params["b3"])

    # Strip batch + lane padding.
    return out[:batch, :num_tasks]


# ----------------------------------------------------------------------------
# Parameter init (mirrors the PyTorch module) + one-time padding for the kernel
# ----------------------------------------------------------------------------
def init_logical_params(key, input_dim, hidden_dim, num_additional_tasks):
    """xavier_uniform_ weights (stored as [in, out]) and 0.3-filled biases."""

    def xavier_uniform(k, fan_in, fan_out):
        bound = math.sqrt(6.0 / (fan_in + fan_out))
        return jax.random.uniform(k, (fan_in, fan_out), jnp.float32,
                                  minval=-bound, maxval=bound)

    k1, k2, k3 = jax.random.split(key, 3)
    return {
        "w1": xavier_uniform(k1, input_dim, hidden_dim),
        "b1": jnp.full((hidden_dim,), 0.3, jnp.float32),
        "w2": xavier_uniform(k2, hidden_dim, hidden_dim),
        "b2": jnp.full((hidden_dim,), 0.3, jnp.float32),
        "w3": xavier_uniform(k3, hidden_dim, num_additional_tasks),
        "b3": jnp.full((num_additional_tasks,), 0.3, jnp.float32),
    }


def pad_params_for_kernel(p):
    """Zero-pad every feature dim to a multiple of 128 and cast weights to
    bf16 (one-time host-side cost). Zero-padded rows/cols contribute nothing
    to the contractions, so the math is unchanged."""

    def pad_w(w):
        i, o = w.shape
        ip, op = _round_up(i, LANE), _round_up(o, LANE)
        wp = jnp.zeros((ip, op), jnp.float32).at[:i, :o].set(w)
        return wp.astype(jnp.bfloat16)

    def pad_b(b):
        (o,) = b.shape
        op = _round_up(o, LANE)
        return jnp.zeros((1, op), jnp.float32).at[0, :o].set(b)

    return {
        "w1": pad_w(p["w1"]), "b1": pad_b(p["b1"]),
        "w2": pad_w(p["w2"]), "b2": pad_b(p["b2"]),
        "w3": pad_w(p["w3"]), "b3": pad_b(p["b3"]),
    }


# ----------------------------------------------------------------------------
# Pure-JAX references
# ----------------------------------------------------------------------------
def reference_forward_f32(x, p):
    h1 = jnp.maximum(x @ p["w1"] + p["b1"], 0.0)
    h2 = jnp.maximum(h1 @ p["w2"] + p["b2"], 0.0)
    return jax.nn.softmax(h2 @ p["w3"] + p["b3"], axis=-1)


def reference_forward_bf16(x, p):
    """Same bf16-weight / f32-accumulate math as the kernel (tight check)."""
    bf = jnp.bfloat16
    h1 = jnp.dot(x.astype(bf), p["w1"].astype(bf),
                 preferred_element_type=jnp.float32) + p["b1"]
    h1 = jnp.maximum(h1, 0.0)
    h2 = jnp.dot(h1.astype(bf), p["w2"].astype(bf),
                 preferred_element_type=jnp.float32) + p["b2"]
    h2 = jnp.maximum(h2, 0.0)
    logits = jnp.dot(h2.astype(bf), p["w3"].astype(bf),
                     preferred_element_type=jnp.float32) + p["b3"]
    return jax.nn.softmax(logits, axis=-1)


if __name__ == "__main__":
    input_dim = 16
    hidden_dim = 32
    num_additional_tasks = 4
    batch = 8

    key = jax.random.PRNGKey(0)
    kx, kp = jax.random.split(key)

    x = jax.random.normal(kx, (batch, input_dim), jnp.float32)
    logical = init_logical_params(kp, input_dim, hidden_dim,
                                  num_additional_tasks)
    params = pad_params_for_kernel(logical)

    out = modelwise_alpha_predictor(x, params, num_tasks=num_additional_tasks)
    out = jax.block_until_ready(out)

    assert out.shape == (batch, num_additional_tasks)
    # Softmax rows sum to 1 (approx reciprocal -> small tolerance).
    assert jnp.allclose(jnp.sum(out, axis=-1), 1.0, atol=5e-3)
    # Tight check vs a reference that uses the same bf16-MXU / f32-acc math.
    ref_bf = reference_forward_bf16(x, logical)
    assert jnp.allclose(out, ref_bf, atol=5e-3), "mismatch vs bf16 reference"
    # Looser check vs the pure-f32 PyTorch-equivalent forward.
    ref32 = reference_forward_f32(x, logical)
    assert jnp.allclose(out, ref32, atol=2e-2), "mismatch vs f32 reference"

    print("KERNEL_OK")
</pallas_src>

<mosaic_0001>
module attributes {stable_mosaic.version = 11 : i64} {
  func.func @_alpha_mlp_kernel(%arg0: i32, %arg1: memref<8x128xbf16, #tpu.memory_space<vmem>>, %arg2: memref<128x128xbf16, #tpu.memory_space<vmem>>, %arg3: memref<1x128xf32, #tpu.memory_space<vmem>>, %arg4: memref<128x128xbf16, #tpu.memory_space<vmem>>, %arg5: memref<1x128xf32, #tpu.memory_space<vmem>>, %arg6: memref<128x128xbf16, #tpu.memory_space<vmem>>, %arg7: memref<1x128xf32, #tpu.memory_space<vmem>>, %arg8: memref<8x128xf32, #tpu.memory_space<vmem>>) attributes {dimension_semantics = [#tpu.dimension_semantics<parallel>], iteration_bounds = array<i64: 1>, scalar_prefetch = 0 : i64, scratch_operands = 0 : i64, tpu.core_type = #tpu.core_type<tc>, window_params = [{transform_indices = @transform_0, window_bounds = array<i64: 8, 128>}, {pipeline_mode = #tpu.pipeline_mode<synchronous>, transform_indices = @transform_1, window_bounds = array<i64: 128, 128>}, {pipeline_mode = #tpu.pipeline_mode<synchronous>, transform_indices = @transform_2, window_bounds = array<i64: 1, 128>}, {pipeline_mode = #tpu.pipeline_mode<synchronous>, transform_indices = @transform_3, window_bounds = array<i64: 128, 128>}, {pipeline_mode = #tpu.pipeline_mode<synchronous>, transform_indices = @transform_4, window_bounds = array<i64: 1, 128>}, {pipeline_mode = #tpu.pipeline_mode<synchronous>, transform_indices = @transform_5, window_bounds = array<i64: 128, 128>}, {pipeline_mode = #tpu.pipeline_mode<synchronous>, transform_indices = @transform_6, window_bounds = array<i64: 1, 128>}, {transform_indices = @transform_7, window_bounds = array<i64: 8, 128>}]} {
    %c0 = arith.constant 0 : index
    %c0_0 = arith.constant 0 : index
    %0 = vector.load %arg1[%c0, %c0_0] : memref<8x128xbf16, #tpu.memory_space<vmem>>, vector<8x128xbf16>
    %c0_1 = arith.constant 0 : index
    %c0_2 = arith.constant 0 : index
    %1 = vector.load %arg2[%c0_1, %c0_2] : memref<128x128xbf16, #tpu.memory_space<vmem>>, vector<128x128xbf16>
    %cst = arith.constant dense<0.000000e+00> : vector<8x128xf32>
    %2 = tpu.matmul %0, %1, %cst {dimension_numbers = #tpu.dot_dimension_numbers<[1], [0], [0], [1], [0, 0, 1, 1], [], []>} : vector<8x128xbf16>, vector<128x128xbf16>, vector<8x128xf32> -> vector<8x128xf32>
    %c0_3 = arith.constant 0 : index
    %c0_4 = arith.constant 0 : index
    %3 = vector.load %arg3[%c0_3, %c0_4] : memref<1x128xf32, #tpu.memory_space<vmem>>, vector<1x128xf32>
    %4 = vector.broadcast %3 : vector<1x128xf32> to vector<8x128xf32>
    %5 = arith.addf %2, %4 : vector<8x128xf32>
    %cst_5 = arith.constant 0.000000e+00 : f32
    %6 = vector.broadcast %cst_5 : f32 to vector<8x128xf32>
    %7 = arith.maximumf %5, %6 : vector<8x128xf32>
    %8 = arith.truncf %7 : vector<8x128xf32> to vector<8x128xbf16>
    %c0_6 = arith.constant 0 : index
    %c0_7 = arith.constant 0 : index
    %9 = vector.load %arg4[%c0_6, %c0_7] : memref<128x128xbf16, #tpu.memory_space<vmem>>, vector<128x128xbf16>
    %cst_8 = arith.constant dense<0.000000e+00> : vector<8x128xf32>
    %10 = tpu.matmul %8, %9, %cst_8 {dimension_numbers = #tpu.dot_dimension_numbers<[1], [0], [0], [1], [0, 0, 1, 1], [], []>} : vector<8x128xbf16>, vector<128x128xbf16>, vector<8x128xf32> -> vector<8x128xf32>
    %c0_9 = arith.constant 0 : index
    %c0_10 = arith.constant 0 : index
    %11 = vector.load %arg5[%c0_9, %c0_10] : memref<1x128xf32, #tpu.memory_space<vmem>>, vector<1x128xf32>
    %12 = vector.broadcast %11 : vector<1x128xf32> to vector<8x128xf32>
    %13 = arith.addf %10, %12 : vector<8x128xf32>
    %cst_11 = arith.constant 0.000000e+00 : f32
    %14 = vector.broadcast %cst_11 : f32 to vector<8x128xf32>
    %15 = arith.maximumf %13, %14 : vector<8x128xf32>
    %16 = arith.truncf %15 : vector<8x128xf32> to vector<8x128xbf16>
    %c0_12 = arith.constant 0 : index
    %c0_13 = arith.constant 0 : index
    %17 = vector.load %arg6[%c0_12, %c0_13] : memref<128x128xbf16, #tpu.memory_space<vmem>>, vector<128x128xbf16>
    %cst_14 = arith.constant dense<0.000000e+00> : vector<8x128xf32>
    %18 = tpu.matmul %16, %17, %cst_14 {dimension_numbers = #tpu.dot_dimension_numbers<[1], [0], [0], [1], [0, 0, 1, 1], [], []>} : vector<8x128xbf16>, vector<128x128xbf16>, vector<8x128xf32> -> vector<8x128xf32>
    %c0_15 = arith.constant 0 : index
    %c0_16 = arith.constant 0 : index
    %19 = vector.load %arg7[%c0_15, %c0_16] : memref<1x128xf32, #tpu.memory_space<vmem>>, vector<1x128xf32>
    %20 = vector.broadcast %19 : vector<1x128xf32> to vector<8x128xf32>
    %21 = arith.addf %18, %20 : vector<8x128xf32>
    %22 = tpu.iota {dimensions = array<i32: 1>} : vector<8x128xi32>
    %c4_i32 = arith.constant 4 : i32
    %23 = vector.broadcast %c4_i32 : i32 to vector<8x128xi32>
    %24 = arith.cmpi slt, %22, %23 : vector<8x128xi32>
    %cst_17 = arith.constant -1.000000e+30 : f32
    %25 = vector.broadcast %cst_17 : f32 to vector<8x128xf32>
    %26 = arith.select %24, %21, %25 : vector<8x128xi1>, vector<8x128xf32>
    %cst_18 = arith.constant dense<0xFF800000> : vector<8xf32>
    %27 = vector.multi_reduction <maximumf>, %26, %cst_18 [1] : vector<8x128xf32> to vector<8xf32>
    %28 = vector.shape_cast %27 : vector<8xf32> to vector<8x1xf32>
    %29 = vector.broadcast %28 : vector<8x1xf32> to vector<8x128xf32>
    %30 = arith.subf %26, %29 : vector<8x128xf32>
    %31 = math.exp %30 : vector<8x128xf32>
    %cst_19 = arith.constant dense<0.000000e+00> : vector<8xf32>
    %32 = vector.multi_reduction <add>, %31, %cst_19 [1] : vector<8x128xf32> to vector<8xf32>
    %33 = vector.shape_cast %32 : vector<8xf32> to vector<8x1xf32>
    %34 = tpu.reciprocal %33 {approx = true} : vector<8x1xf32> -> vector<8x1xf32>
    %35 = vector.broadcast %34 : vector<8x1xf32> to vector<8x128xf32>
    %36 = arith.mulf %31, %35 : vector<8x128xf32>
    %c0_20 = arith.constant 0 : index
    %c0_21 = arith.constant 0 : index
    %37 = vector.load %arg8[%c0_20, %c0_21] : memref<8x128xf32, #tpu.memory_space<vmem>>, vector<8x128xf32>
    tpu.vector_store %arg8[%c0_20, %c0_21], %36 {strides = array<i32>} : memref<8x128xf32, #tpu.memory_space<vmem>>, vector<8x128xf32>,
    return
  }
  func.func @transform_0(%arg0: i32) -> (i32, i32) {
    %c0_i32 = arith.constant 0 : i32
    %c0_i32_0 = arith.constant 0 : i32
    return %arg0, %c0_i32 : i32, i32
  }
  func.func @transform_1(%arg0: i32) -> (i32, i32) {
    %c0_i32 = arith.constant 0 : i32
    %c0_i32_0 = arith.constant 0 : i32
    %c0_i32_1 = arith.constant 0 : i32
    return %c0_i32, %c0_i32_0 : i32, i32
  }
  func.func @transform_2(%arg0: i32) -> (i32, i32) {
    %c0_i32 = arith.constant 0 : i32
    %c0_i32_0 = arith.constant 0 : i32
    %c0_i32_1 = arith.constant 0 : i32
    return %c0_i32, %c0_i32_0 : i32, i32
  }
  func.func @transform_3(%arg0: i32) -> (i32, i32) {
    %c0_i32 = arith.constant 0 : i32
    %c0_i32_0 = arith.constant 0 : i32
    %c0_i32_1 = arith.constant 0 : i32
    return %c0_i32, %c0_i32_0 : i32, i32
  }
  func.func @transform_4(%arg0: i32) -> (i32, i32) {
    %c0_i32 = arith.constant 0 : i32
    %c0_i32_0 = arith.constant 0 : i32
    %c0_i32_1 = arith.constant 0 : i32
    return %c0_i32, %c0_i32_0 : i32, i32
  }
  func.func @transform_5(%arg0: i32) -> (i32, i32) {
    %c0_i32 = arith.constant 0 : i32
    %c0_i32_0 = arith.constant 0 : i32
    %c0_i32_1 = arith.constant 0 : i32
    return %c0_i32, %c0_i32_0 : i32, i32
  }
  func.func @transform_6(%arg0: i32) -> (i32, i32) {
    %c0_i32 = arith.constant 0 : i32
    %c0_i32_0 = arith.constant 0 : i32
    %c0_i32_1 = arith.constant 0 : i32
    return %c0_i32, %c0_i32_0 : i32, i32
  }
  func.func @transform_7(%arg0: i32) -> (i32, i32) {
    %c0_i32 = arith.constant 0 : i32
    %c0_i32_0 = arith.constant 0 : i32
    return %arg0, %c0_i32 : i32, i32
  }
}

</mosaic_0001>

<bundles_post_ra>
// kernel: tpu_custom_call.1
= control target key start
LH: loop header
LB: loop body
LE: loop exit
PB: predicated region body
PF: predicated region fallthrough
CT: control target
= control target key end

     0   :  { %12 = vsyncpa [#allocation3], 0  ;;  %s1012_s0 = inlined_call_operand.hbm [shape: bf16[8,128], index: 0, kind: input, shape index: {}]   ;;  %s1013_s1 = inlined_call_operand.hbm [shape: bf16[128,128], index: 1, kind: input, shape index: {}]   ;;  %s1014_s2 = inlined_call_operand.hbm [shape: f32[1,128], index: 2, kind: input, shape index: {}]   ;;  %s1015_s3 = inlined_call_operand.hbm [shape: bf16[128,128], index: 3, kind: input, shape index: {}]   ;;  %s1016_s4 = inlined_call_operand.hbm [shape: f32[1,128], index: 4, kind: input, shape index: {}]   ;;  %s1017_s5 = inlined_call_operand.hbm [shape: bf16[128,128], index: 5, kind: input, shape index: {}]   ;;  %s1018_s6 = inlined_call_operand.hbm [shape: f32[1,128], index: 6, kind: input, shape index: {}]   ;;  %s1019_s7 = inlined_call_operand.hbm [shape: f32[8,128], index: 7, kind: output, shape index: {}]  }
   0x1   :  { %13 = vsyncpa [#allocation6], 0 }
   0x2   :  { %14 = vsyncpa [#allocation9], 0 }
   0x3   :  { %15 = vsyncpa [#allocation12], 0 }
   0x4   :  { %16 = vsyncpa [#allocation4], 0  ;;  %s825_s24 = smov [#allocation5]   ;;  %s639_s28 = scalar_lea.hbm %s1013_s1, 1024 }
   0x5   :  { %s32_s25 = sshll.u32 %s825_s24, 4  ;;  %p640_p0 = scmp.ne.s32.totalorder %s1013_s1, %s639_s28  ;;  %s33_s25 = int_to_ptr.vmem [resolvable:$true] %s32_s25 }
   0x6   :  { %p643_p1 = scmp.lt.u32.totalorder %s639_s28, %s1013_s1 }
   0x8   :  { %p645_p2 = pnand %p643_p1, %p640_p0 }
   0xa   :  { %648 = shalt.err (!%p645_p2)
}
   0xb   :  { %s649_s10 = scalar_lea.vmem %s33_s25, 1024  ;;  %p654_p4 = scmp.lt.s32.totalorder %s33_s25, %s33_s25 }
   0xc   :  { %p650_p3 = scmp.ne.s32.totalorder %s33_s25, %s649_s10  ;;  %p655_p5 = scmp.lt.s32.totalorder %s649_s10, %s649_s10 }
   0xe   :  { %p656_p6 = por %p655_p5, %p654_p4 }
  0x10   :  { %p657_p7 = pnand %p656_p6, %p650_p3 }
  0x12   :  { %660 = shalt.err (!%p657_p7)
}
  0x13   :  { %s826_s11 = smov 64   ;;  %s827_s12 = smov 4  }
  0x14   :  { %38 = dma.hbm_to_vmem [thread:$0]  %s1013_s1, 1024, %s33_s25, [#allocation6], %s826_s11, %s826_s11, %s827_s12  }
  0x15   :  { %s828_s15 = smov [#allocation8]   ;;  %s829_s17 = smov [#allocation11]  }
  0x16   :  { %s54_s16 = sshll.u32 %s828_s15, 4  ;;  %s76_s18 = sshll.u32 %s829_s17, 4  ;;  %s55_s16 = int_to_ptr.vmem [resolvable:$true] %s54_s16  ;;  %s77_s18 = int_to_ptr.vmem [resolvable:$true] %s76_s18 }
  0x17   :  { %s661_s21 = scalar_lea.hbm %s1015_s3, 1024 }
  0x18   :  { %p662_p8 = scmp.ne.s32.totalorder %s1015_s3, %s661_s21  ;;  %p665_p9 = scmp.lt.u32.totalorder %s661_s21, %s1015_s3 }
  0x1a   :  { %p667_p10 = pnand %p665_p9, %p662_p8 }
  0x1c   :  { %670 = shalt.err (!%p667_p10)
}
  0x1d   :  { %s671_s1 = scalar_lea.vmem %s55_s16, 1024  ;;  %p676_p12 = scmp.lt.s32.totalorder %s55_s16, %s55_s16 }
  0x1e   :  { %p672_p11 = scmp.ne.s32.totalorder %s55_s16, %s671_s1  ;;  %p677_p13 = scmp.lt.s32.totalorder %s671_s1, %s671_s1 }
  0x20   :  { %p678_p0 = por %p677_p13, %p676_p12 }
  0x22   :  { %p679_p1 = pnand %p678_p0, %p672_p11 }
  0x24   :  { %682 = shalt.err (!%p679_p1)
}
  0x25   :  { %60 = dma.hbm_to_vmem [thread:$0]  %s1015_s3, 1024, %s55_s16, [#allocation9], %s826_s11, %s826_s11, %s827_s12  }
  0x26   :  { %s683_s30 = scalar_lea.hbm %s1017_s5, 1024 }
  0x27   :  { %p684_p2 = scmp.ne.s32.totalorder %s1017_s5, %s683_s30  ;;  %p687_p3 = scmp.lt.u32.totalorder %s683_s30, %s1017_s5 }
  0x29   :  { %p689_p4 = pnand %p687_p3, %p684_p2 }
  0x2b   :  { %692 = shalt.err (!%p689_p4)
}
  0x2c   :  { %s693_s14 = scalar_lea.vmem %s77_s18, 1024  ;;  %p698_p6 = scmp.lt.s32.totalorder %s77_s18, %s77_s18 }
  0x2d   :  { %p694_p5 = scmp.ne.s32.totalorder %s77_s18, %s693_s14  ;;  %p699_p7 = scmp.lt.s32.totalorder %s693_s14, %s693_s14 }
  0x2f   :  { %p700_p8 = por %p699_p7, %p698_p6 }
  0x31   :  { %p701_p9 = pnand %p700_p8, %p694_p5 }
  0x33   :  { %704 = shalt.err (!%p701_p9)
}
  0x34   :  { %82 = dma.hbm_to_vmem [thread:$0]  %s1017_s5, 1024, %s77_s18, [#allocation12], %s826_s11, %s826_s11, %s827_s12  }
  0x35   :  { %s830_s16 = smov [#allocation2]   ;;  %s831_s19 = smov [#allocation7]  }
  0x36   :  { %s23_s17 = sshll.u32 %s830_s16, 4  ;;  %s45_s20 = sshll.u32 %s831_s19, 4  ;;  %s24_s17 = int_to_ptr.vmem [resolvable:$true] %s23_s17  ;;  %s46_s20 = int_to_ptr.vmem [resolvable:$true] %s45_s20 }
  0x37   :  { %s705_s23 = scalar_lea.hbm %s1012_s0, 64 }
  0x38   :  { %p706_p10 = scmp.ne.s32.totalorder %s1012_s0, %s705_s23  ;;  %p709_p11 = scmp.lt.u32.totalorder %s705_s23, %s1012_s0 }
  0x3a   :  { %p711_p12 = pnand %p709_p11, %p706_p10 }
  0x3c   :  { %714 = shalt.err (!%p711_p12)
}
  0x3d   :  { %s715_s5 = scalar_lea.vmem %s24_s17, 64  ;;  %p720_p0 = scmp.lt.s32.totalorder %s24_s17, %s24_s17 }
  0x3e   :  { %p716_p13 = scmp.ne.s32.totalorder %s24_s17, %s715_s5  ;;  %p721_p1 = scmp.lt.s32.totalorder %s715_s5, %s715_s5 }
  0x40   :  { %p722_p2 = por %p721_p1, %p720_p0 }
  0x42   :  { %p723_p3 = pnand %p722_p2, %p716_p13 }
  0x44   :  { %726 = shalt.err (!%p723_p3)
}
  0x45   :  { %26 = dma.hbm_to_vmem [thread:$0]  %s1012_s0, 64, %s24_s17, [#allocation3]  }
  0x46   :  { %s727_s28 = scalar_lea.hbm %s1014_s2, 16 }
  0x47   :  { %p728_p4 = scmp.ne.s32.totalorder %s1014_s2, %s727_s28  ;;  %p731_p5 = scmp.lt.u32.totalorder %s727_s28, %s1014_s2 }
  0x49   :  { %p733_p6 = pnand %p731_p5, %p728_p4 }
  0x4b   :  { %736 = shalt.err (!%p733_p6)
}
  0x4c   :  { %s737_s10 = scalar_lea.vmem %s46_s20, 16  ;;  %s741_s13 = scalar_lea.vmem %s46_s20, 32 }
  0x4d   :  { %p738_p7 = scmp.ne.s32.totalorder %s46_s20, %s737_s10  ;;  %p742_p8 = scmp.lt.s32.totalorder %s46_s20, %s46_s20 }
  0x4e   :  { %p743_p9 = scmp.lt.s32.totalorder %s741_s13, %s737_s10 }
  0x50   :  { %p744_p10 = por %p743_p9, %p742_p8 }
  0x52   :  { %p745_p11 = pnand %p744_p10, %p738_p7 }
  0x54   :  { %748 = shalt.err (!%p745_p11)
}
  0x55   :  { %48 = dma.hbm_to_vmem [thread:$0]  %s1014_s2, 16, %s46_s20, [#allocation6]  }
  0x56   :  { %s832_s3 = smov [#allocation10]   ;;  %s833_s16 = smov [#allocation13]  }
  0x57   :  { %s67_s15 = sshll.u32 %s832_s3, 4  ;;  %s89_s17 = sshll.u32 %s833_s16, 4  ;;  %s68_s15 = int_to_ptr.vmem [resolvable:$true] %s67_s15  ;;  %s90_s17 = int_to_ptr.vmem [resolvable:$true] %s89_s17 }
  0x58   :  { %s749_s22 = scalar_lea.hbm %s1016_s4, 16 }
  0x59   :  { %p750_p12 = scmp.ne.s32.totalorder %s1016_s4, %s749_s22  ;;  %p753_p13 = scmp.lt.u32.totalorder %s749_s22, %s1016_s4 }
  0x5b   :  { %p755_p0 = pnand %p753_p13, %p750_p12 }
  0x5d   :  { %758 = shalt.err (!%p755_p0)
}
  0x5e   :  { %s759_s2 = scalar_lea.vmem %s68_s15, 16  ;;  %s763_s20 = scalar_lea.vmem %s68_s15, 32 }
  0x5f   :  { %p760_p1 = scmp.ne.s32.totalorder %s68_s15, %s759_s2  ;;  %p764_p2 = scmp.lt.s32.totalorder %s68_s15, %s68_s15 }
  0x60   :  { %p765_p3 = scmp.lt.s32.totalorder %s763_s20, %s759_s2 }
  0x62   :  { %p766_p4 = por %p765_p3, %p764_p2 }
  0x64   :  { %p767_p5 = pnand %p766_p4, %p760_p1 }
  0x66   :  { %770 = shalt.err (!%p767_p5)
}
  0x67   :  { %70 = dma.hbm_to_vmem [thread:$0]  %s1016_s4, 16, %s68_s15, [#allocation9]  }
  0x68   :  { %s771_s18 = scalar_lea.hbm %s1018_s6, 16 }
  0x69   :  { %p772_p6 = scmp.ne.s32.totalorder %s1018_s6, %s771_s18  ;;  %p775_p7 = scmp.lt.u32.totalorder %s771_s18, %s1018_s6 }
  0x6b   :  { %p777_p8 = pnand %p775_p7, %p772_p6 }
  0x6d   :  { %780 = shalt.err (!%p777_p8)
}
  0x6e   :  { %s781_s8 = scalar_lea.vmem %s90_s17, 16  ;;  %s785_s9 = scalar_lea.vmem %s90_s17, 32 }
  0x6f   :  { %p782_p9 = scmp.ne.s32.totalorder %s90_s17, %s781_s8  ;;  %p786_p10 = scmp.lt.s32.totalorder %s90_s17, %s90_s17 }
  0x70   :  { %p787_p11 = scmp.lt.s32.totalorder %s785_s9, %s781_s8 }
  0x72   :  { %p788_p12 = por %p787_p11, %p786_p10 }
  0x74   :  { %p789_p13 = pnand %p788_p12, %p782_p9 }
  0x76   :  { %792 = shalt.err (!%p789_p13)
}
  0x77   :  { %92 = dma.hbm_to_vmem [thread:$0]  %s1018_s6, 16, %s90_s17, [#allocation12]  }
  0x78   :  { %815 = dma.done.wait [#allocation3], 64  }
  0x79   :  { %816 = vsyncadd [#allocation3], 4294967232 }
  0x7a   :  { %817 = dma.done.wait [#allocation6], 1040  }
  0x7b   :  { %818 = vsyncadd [#allocation6], 4294966256 }
  0x7c   :  { %819 = dma.done.wait [#allocation9], 1040  }
  0x7d   :  { %820 = vsyncadd [#allocation9], 4294966256 }
  0x7e   :  { %821 = dma.done.wait [#allocation12], 1040  }
  0x7f   :  { %822 = vsyncadd [#allocation12], 4294966256  ;;  %v834_v0 = vmov 0.0   ;;  %vm835_vm0 = vmmov 0   ;;  %v611_v1 = vld [vmem:[#allocation5] sm:$0xff]   ;;  %v612_v2 = vld [vmem:[#allocation5 + $0x8] sm:$0xff]   ;;  %v453_v42 = vlaneseq }
  0x80   :  { %539 = vmatprep.subr.bf16.mxu0 %v834_v0  ;;  %555 = vmatprep.mubr.msk.bf16.mxu0 %vm835_vm0, %v834_v0  ;;  %v613_v3 = vld [vmem:[#allocation5 + $0x10] sm:$0xff]   ;;  %v619_v4 = vld [vmem:[#allocation8] sm:$0xff]   ;;  %v614_v5 = vld [vmem:[#allocation5 + $0x18] sm:$0xff]   ;;  %s836_s6 = smov [#allocation14]  }
  0x81   :  { %559 = vmatprep.subr.bf16.mxu1 %v834_v0  ;;  %575 = vmatprep.mubr.msk.bf16.mxu1 %vm835_vm0, %v834_v0  ;;  %v620_v6 = vld [vmem:[#allocation8 + $0x8] sm:$0xff]   ;;  %v615_v7 = vld [vmem:[#allocation5 + $0x20] sm:$0xff]   ;;  %v621_v8 = vld [vmem:[#allocation8 + $0x10] sm:$0xff]   ;;  %v454_v43 = vand.u32 127, %v453_v42  ;;  %s473_s13 = sshll.u32 %s836_s6, 4  ;;  %s474_s13 = int_to_ptr.vmem [resolvable:$true] %s473_s13 }
  0x82   :  { %540 = vmatpush3.bf16.msra.mxu0 %v611_v1  ;;  %560 = vmatpush3.bf16.msra.mxu1 %v619_v4  ;;  %v616_v9 = vld [vmem:[#allocation5 + $0x28] sm:$0xff]   ;;  %v622_v10 = vld [vmem:[#allocation8 + $0x18] sm:$0xff]   ;;  %v617_v11 = vld [vmem:[#allocation5 + $0x30] sm:$0xff]   ;;  %s793_s0 = scalar_lea.vmem %s474_s13, 128  ;;  %p798_p1 = scmp.lt.s32.totalorder %s474_s13, %s474_s13 }
  0x83   :  { %541 = vmatprep.subr.bf16.mxu0 %v834_v0  ;;  %561 = vmatprep.subr.bf16.mxu1 %v834_v0  ;;  %v623_v12 = vld [vmem:[#allocation8 + $0x20] sm:$0xff]   ;;  %v618_v13 = vld [vmem:[#allocation5 + $0x38] sm:$0xff]   ;;  %v624_v14 = vld [vmem:[#allocation8 + $0x28] sm:$0xff]   ;;  %vm455_vm1 = vcmp.lt.s32.totalorder %v454_v43, 4  ;;  %p794_p0 = scmp.ne.s32.totalorder %s474_s13, %s793_s0  ;;  %p799_p2 = scmp.lt.s32.totalorder %s793_s0, %s793_s0 }
  0x84   :  { %v115_v15 = vld [vmem:[#allocation2] sm:$0xf]  ;;  %v625_v16 = vld [vmem:[#allocation8 + $0x30] sm:$0xff]   ;;  %v627_v18 = vld [vmem:[#allocation11] sm:$0xff]  }
  0x85   :  { %v626_v17 = vld [vmem:[#allocation8 + $0x38] sm:$0xff]   ;;  %v628_v19 = vld [vmem:[#allocation11 + $0x8] sm:$0xff]   ;;  %v631_v22 = vld [vmem:[#allocation11 + $0x20] sm:$0xff]   ;;  %p800_p3 = por %p799_p2, %p798_p1 }
  0x86   :  { %542 = vmatpush3.bf16.msra.mxu0 %v612_v2  ;;  %562 = vmatpush3.bf16.msra.mxu1 %v620_v6  ;;  %v629_v20 = vld [vmem:[#allocation11 + $0x10] sm:$0xff]   ;;  %v630_v21 = vld [vmem:[#allocation11 + $0x18] sm:$0xff]   ;;  %v632_v23 = vld [vmem:[#allocation11 + $0x28] sm:$0xff]  }
  0x87   :  { %543 = vmatprep.subr.bf16.mxu0 %v834_v0  ;;  %563 = vmatprep.subr.bf16.mxu1 %v834_v0  ;;  %v485_v24 = vld [vmem:[#allocation7] ss:$0 sm:$0xff]  ;;  %v633_v32 = vld [vmem:[#allocation11 + $0x30] sm:$0xff]   ;;  %v494_v34 = vld [vmem:[#allocation10] ss:$0 sm:$0xff]  ;;  %p801_p4 = pnand %p800_p3, %p794_p0 }
  0x88   :  { %v634_v33 = vld [vmem:[#allocation11 + $0x38] sm:$0xff]   ;;  %v503_v44 = vld [vmem:[#allocation13] ss:$0 sm:$0xff] }
  0x8a   :  { %544 = vmatpush3.bf16.msra.mxu0 %v613_v3  ;;  %564 = vmatpush3.bf16.msra.mxu1 %v621_v8 }
  0x8b   :  { %545 = vmatprep.subr.bf16.mxu0 %v834_v0  ;;  %565 = vmatprep.subr.bf16.mxu1 %v834_v0 }
  0x8e   :  { %546 = vmatpush3.bf16.msra.mxu0 %v614_v5  ;;  %566 = vmatpush3.bf16.msra.mxu1 %v622_v10 }
  0x8f   :  { %547 = vmatprep.subr.bf16.mxu0 %v834_v0  ;;  %567 = vmatprep.subr.bf16.mxu1 %v834_v0 }
  0x92   :  { %548 = vmatpush3.bf16.msra.mxu0 %v615_v7  ;;  %568 = vmatpush3.bf16.msra.mxu1 %v623_v12 }
  0x93   :  { %549 = vmatprep.subr.bf16.mxu0 %v834_v0  ;;  %569 = vmatprep.subr.bf16.mxu1 %v834_v0 }
  0x96   :  { %550 = vmatpush3.bf16.msra.mxu0 %v616_v9  ;;  %570 = vmatpush3.bf16.msra.mxu1 %v624_v14 }
  0x97   :  { %551 = vmatprep.subr.bf16.mxu0 %v834_v0  ;;  %571 = vmatprep.subr.bf16.mxu1 %v834_v0 }
  0x9a   :  { %552 = vmatpush3.bf16.msra.mxu0 %v617_v11  ;;  %572 = vmatpush3.bf16.msra.mxu1 %v625_v16 }
  0x9b   :  { %553 = vmatprep.subr.bf16.mxu0 %v834_v0  ;;  %573 = vmatprep.subr.bf16.mxu1 %v834_v0 }
  0x9e   :  { %554 = vmatpush3.bf16.msra.mxu0 %v618_v13  ;;  %574 = vmatpush3.bf16.msra.mxu1 %v626_v17 }
  0x9f   :  { %579 = vmatprep.subr.bf16.mxu0 %v834_v0 }
  0xa1   :  { %556 = vmatmul.mubr.bf16.vlgmr.msra.gmra.mrb[0].mxu0 %v115_v15 }
  0xa2   :  { %595 = vmatprep.mubr.msk.bf16.mxu0 %vm835_vm0, %v834_v0  ;;  %580 = vmatpush3.bf16.msra.mxu0 %v627_v18 }
  0xa3   :  { %581 = vmatprep.subr.bf16.mxu0 %v834_v0 }
  0xa6   :  { %582 = vmatpush3.bf16.msra.mxu0 %v628_v19 }
  0xa7   :  { %583 = vmatprep.subr.bf16.mxu0 %v834_v0 }
  0xaa   :  { %584 = vmatpush3.bf16.msra.mxu0 %v629_v20 }
  0xab   :  { %585 = vmatprep.subr.bf16.mxu0 %v834_v0 }
  0xae   :  { %586 = vmatpush3.bf16.msra.mxu0 %v630_v21 }
  0xaf   :  { %587 = vmatprep.subr.bf16.mxu0 %v834_v0 }
  0xb2   :  { %588 = vmatpush3.bf16.msra.mxu0 %v631_v22 }
  0xb3   :  { %589 = vmatprep.subr.bf16.mxu0 %v834_v0 }
  0xb6   :  { %590 = vmatpush3.bf16.msra.mxu0 %v632_v23 }
  0xb7   :  { %591 = vmatprep.subr.bf16.mxu0 %v834_v0 }
  0xba   :  { %592 = vmatpush3.bf16.msra.mxu0 %v633_v32 }
  0xbb   :  { %593 = vmatprep.subr.bf16.mxu0 %v834_v0 }
  0xbe   :  { %594 = vmatpush3.bf16.msra.mxu0 %v634_v33 }
 0x174   :  { %v221_v25 = vpop.f32.mrb[0].mxu0 }
 0x175   :  { %v222_v26 = vadd.f32 %v485_v24, %v221_v25  ;;  %v557_v27 = vpop.f32.mrb[1].mxu0 }
 0x176   :  { %v224_v28 = vpop.f32.mrb[2].mxu0 }
 0x177   :  { %v227_v29 = vmax.f32 %v222_v26, 0.0  ;;  %v558_v30 = vpop.f32.mrb[3].mxu0 }
 0x179   :  { %v228_v31 = vpack.c.bf16 %v227_v29, %v227_v29 }
 0x17b   :  { %576 = vmatmul.mubr.bf16.vlgmr.msra.gmra.mrb[0].mxu1 %v228_v31 }
 0x24e   :  { %v334_v35 = vpop.f32.mrb[0].mxu1 }
 0x24f   :  { %v335_v36 = vadd.f32 %v494_v34, %v334_v35  ;;  %v577_v37 = vpop.f32.mrb[1].mxu1 }
 0x250   :  { %v337_v38 = vpop.f32.mrb[2].mxu1 }
 0x251   :  { %v340_v39 = vmax.f32 %v335_v36, 0.0  ;;  %v578_v40 = vpop.f32.mrb[3].mxu1 }
 0x253   :  { %v341_v41 = vpack.c.bf16 %v340_v39, %v340_v39 }
 0x255   :  { %596 = vmatmul.mubr.bf16.vlgmr.msra.gmra.mrb[4].mxu0 %v341_v41 }
 0x328   :  { %v447_v45 = vpop.f32.mrb[4].mxu0 }
 0x329   :  { %v448_v46 = vadd.f32 %v503_v44, %v447_v45  ;;  %v597_v47 = vpop.f32.mrb[5].mxu0 }
 0x32a   :  { %v450_v48 = vpop.f32.mrb[6].mxu0 }
 0x32b   :  { %v598_v49 = vpop.f32.mrb[7].mxu0  ;;  %v456_v50 = vsel %vm455_vm1, %v448_v46, -1e+30 }
 0x32c   :  { %457 = vmax.xlane.f32.xlu0 %v456_v50 }
 0x3b9   :  { %v458_v51 = vpop.xlane.xlu0 %457 }
 0x3ba   :  { %v459_v52 = vsub.f32 %v456_v50, %v458_v51 }
 0x3bc   :  { %v460_v53 = vmul.f32 1.442695, %v459_v52 }
 0x3be   :  { %635 = vpow2.f32 %v460_v53 }
 0x3c8   :  { %v636_v54 = vpop.eup %635 }
 0x3c9   :  { %462 = vadd.xlane.f32.xlu0 %v636_v54 }
 0x456   :  { %v463_v55 = vpop.xlane.xlu0 %462 }
 0x457   :  { %637 = vrcp.f32 %v463_v55 }
 0x461   :  { %v638_v56 = vpop.eup %637 }
 0x462   :  { %v465_v57 = vmul.f32 %v638_v56, %v636_v54 }
 0x464   :  { %466 = vst [vmem:[#allocation14] sm:$0xff] %v465_v57 }
 0x465   :  { %804 = shalt.err (!%p801_p4)
}
 0x466   :  { %s805_s15 = scalar_lea.hbm %s1019_s7, 128 }
 0x467   :  { %p806_p5 = scmp.ne.s32.totalorder %s1019_s7, %s805_s15  ;;  %p809_p6 = scmp.lt.u32.totalorder %s805_s15, %s1019_s7 }
 0x469   :  { %p811_p7 = pnand %p809_p6, %p806_p5 }
 0x46b   :  { %814 = shalt.err (!%p811_p7)
}
 0x46c   :  { %476 = dma.vmem_to_hbm [thread:$0]  %s474_s13, 128, %s1019_s7, [#allocation4]  }
 0x46d   :  { %823 = dma.done.wait [#allocation4], 128  }
 0x46e   :  { %824 = vsyncadd [#allocation4], 4294967168 }
 0x46f   :  { %480 = vsyncpa [#allocation3], 1 }
 0x470   :  { %481 = vsyncpa [#allocation6], 1 }
 0x471   :  { %482 = vsyncpa [#allocation9], 1 }
 0x472   :  { %483 = vsyncpa [#allocation12], 1 }
 0x473   :  { %484 = vsyncpa [#allocation4], 1 }

</bundles_post_ra>
